<compile_context>
chip_gen: v6e
topology: v6e:2x2x1
jax: 0.10.0
libtpu: 0.0.40
codegen_flags: <defaults>
</compile_context>

<pallas_src>
import functools

import jax
import jax.numpy as jnp
from jax.experimental import pallas as pl
from jax.experimental.pallas import tpu as pltpu


def _round_up(x, m):
    return ((x + m - 1) // m) * m


def _sublane_align(dtype):
    # f32 -> 8 rows, bf16 -> 16 rows, int8/fp8 -> 32 rows.
    return max(8, 32 // jnp.dtype(dtype).itemsize)


def _sccl_projector_kernel(x_ref, w1_ref, b1_ref, w2_ref, b2_ref, out_ref,
                           *, mxu_dtype):
    # x_ref : (TILE_B, input_dim)   f32 (or bf16) straight from HBM
    # w1_ref: (input_dim, proj_dim) mxu_dtype (resident in VMEM)
    # b1_ref: (1, proj_dim)         f32
    # w2_ref: (proj_dim, proj_dim)  mxu_dtype
    # b2_ref: (1, proj_dim)         f32
    # out_ref: (TILE_B, proj_dim)   f32 or bf16
    x = x_ref[...].astype(mxu_dtype)          # in-kernel cast: no extra HBM traffic

    # fc1 (MXU, f32 accumulate) + bias + ReLU in f32
    h = jnp.dot(x, w1_ref[...], preferred_element_type=jnp.float32)
    h = jnp.maximum(h + b1_ref[...], 0.0)

    # fc2 (MXU in the weight dtype, f32 accumulate) + bias
    y = jnp.dot(h.astype(mxu_dtype), w2_ref[...],
                preferred_element_type=jnp.float32)
    y = y + b2_ref[...]

    # F.normalize(dim=-1): y / max(||y||, 1e-12)
    #   == y * rsqrt(max(||y||^2, 1e-24))   (sqrt is monotone)
    # lane-axis sum -> XLU, rsqrt -> EUP: off the VALU critical path.
    s = jnp.sum(y * y, axis=-1, keepdims=True)
    out = y * jax.lax.rsqrt(jnp.maximum(s, 1e-24))

    out_ref[...] = out.astype(out_ref.dtype)


def sccl_encoder_forward(embeddings, w1, b1, w2, b2, *,
                         mxu_bf16=True, out_dtype=jnp.float32,
                         max_tile_b=None):
    """ProjectionHead + L2 normalize via a batch-tiled Pallas kernel.

    embeddings: (B, input_dim) f32 or bf16 -- stands in for encoder.encode(...)
    w1: (input_dim, proj_dim), b1: (proj_dim,)
    w2: (proj_dim, proj_dim),  b2: (proj_dim,)
    """
    B, input_dim = embeddings.shape
    proj_dim = w1.shape[1]

    # --- generation-aware tile / VMEM sizing (conservative default = v7x-safe)
    kind = ""
    try:
        kind = jax.devices()[0].device_kind.lower()
    except Exception:
        pass
    big_vmem = ("v5" in kind) or ("v6" in kind)      # 128 MiB VMEM parts
    if max_tile_b is None:
        max_tile_b = 4096 if big_vmem else 2048      # v7x: keep <= 2048 rows
    vmem_limit = (96 << 20) if big_vmem else (48 << 20)

    # --- batch tiling: no host-side pad; ragged last block is masked by Pallas
    row_align = max(_sublane_align(embeddings.dtype), _sublane_align(out_dtype))
    if B <= row_align:
        tile_b = B                                   # full-dim block is always legal
    else:
        tile_b = _round_up(min(B, max_tile_b), row_align)
        # ensure >= 2 grid steps so the "parallel" batch axis shards across
        # both v7x TensorCores (harmless on single-TC chips)
        tile_b = min(tile_b, _round_up(pl.cdiv(B, 2), row_align))
    grid = (pl.cdiv(B, tile_b),)

    # --- operand dtypes: x stays as-is in HBM (kernel casts); weights are tiny
    mxu_dtype = jnp.bfloat16 if mxu_bf16 else jnp.float32
    w1_in = w1.astype(mxu_dtype)
    w2_in = w2.astype(mxu_dtype)
    b1_2d = b1.reshape(1, proj_dim).astype(jnp.float32)
    b2_2d = b2.reshape(1, proj_dim).astype(jnp.float32)

    cost = pl.CostEstimate(
        flops=int(2 * B * input_dim * proj_dim
                  + 2 * B * proj_dim * proj_dim
                  + 6 * B * proj_dim),
        transcendentals=int(B),
        bytes_accessed=int(B * input_dim * jnp.dtype(embeddings.dtype).itemsize
                           + B * proj_dim * jnp.dtype(out_dtype).itemsize
                           + w1_in.size * jnp.dtype(mxu_dtype).itemsize
                           + w2_in.size * jnp.dtype(mxu_dtype).itemsize
                           + 2 * proj_dim * 4),
    )

    kernel = functools.partial(_sccl_projector_kernel, mxu_dtype=mxu_dtype)

    out = pl.pallas_call(
        kernel,
        out_shape=jax.ShapeDtypeStruct((B, proj_dim), out_dtype),
        grid=grid,
        in_specs=[
            # x: tiled over the batch axis -> pipelined / double-buffered
            pl.BlockSpec((tile_b, input_dim), lambda i: (i, 0)),
            # weights & biases: constant block -> stay resident in VMEM
            pl.BlockSpec((input_dim, proj_dim), lambda i: (0, 0)),
            pl.BlockSpec((1, proj_dim), lambda i: (0, 0)),
            pl.BlockSpec((proj_dim, proj_dim), lambda i: (0, 0)),
            pl.BlockSpec((1, proj_dim), lambda i: (0, 0)),
        ],
        out_specs=pl.BlockSpec((tile_b, proj_dim), lambda i: (i, 0)),
        compiler_params=pltpu.CompilerParams(
            dimension_semantics=("parallel",),
            vmem_limit_bytes=vmem_limit,
        ),
        cost_estimate=cost,
    )(embeddings, w1_in, b1_2d, w2_in, b2_2d)

    return out


def _reference(embeddings, w1, b1, w2, b2):
    h = jnp.maximum(embeddings @ w1 + b1, 0.0)
    y = h @ w2 + b2
    norm = jnp.sqrt(jnp.sum(y * y, axis=-1, keepdims=True))
    return y / jnp.maximum(norm, 1e-12)


if __name__ == "__main__":
    input_dim = 1024    # ProjectionHead default
    proj_dim = 128      # ProjectionHead default

    key = jax.random.PRNGKey(0)
    k_x, k_w1, k_b1, k_w2, k_b2, k_x2 = jax.random.split(key, 6)

    # Deterministic PyTorch-Linear-style uniform init, weights stored as
    # [in_features, out_features] (i.e. already transposed for x @ W).
    bound1 = 1.0 / (input_dim ** 0.5)
    w1 = jax.random.uniform(k_w1, (input_dim, proj_dim), jnp.float32, -bound1, bound1)
    b1 = jax.random.uniform(k_b1, (proj_dim,), jnp.float32, -bound1, bound1)
    bound2 = 1.0 / (proj_dim ** 0.5)
    w2 = jax.random.uniform(k_w2, (proj_dim, proj_dim), jnp.float32, -bound2, bound2)
    b2 = jax.random.uniform(k_b2, (proj_dim,), jnp.float32, -bound2, bound2)

    # ---- Test 1: small batch (B=8), exact f32 path, single grid step --------
    batch = 8
    embeddings = jax.random.normal(k_x, (batch, input_dim), dtype=jnp.float32)
    out = sccl_encoder_forward(embeddings, w1, b1, w2, b2, mxu_bf16=False)
    out = jax.block_until_ready(out)
    ref = _reference(embeddings, w1, b1, w2, b2)
    assert out.shape == (batch, proj_dim)
    assert jnp.allclose(out, ref, atol=1e-5, rtol=1e-5), "f32 small-batch mismatch"
    assert jnp.allclose(jnp.linalg.norm(out, axis=-1), 1.0, atol=1e-5)

    # ---- Test 2: ragged batch, multi-step grid, exact f32 path, no host pad -
    batch2 = 200
    embeddings2 = jax.random.normal(k_x2, (batch2, input_dim), dtype=jnp.float32)
    out2 = sccl_encoder_forward(embeddings2, w1, b1, w2, b2,
                                mxu_bf16=False, max_tile_b=64)
    out2 = jax.block_until_ready(out2)
    ref2 = _reference(embeddings2, w1, b1, w2, b2)
    assert out2.shape == (batch2, proj_dim)
    assert jnp.allclose(out2, ref2, atol=1e-5, rtol=1e-5), "f32 tiled-batch mismatch"

    # ---- Test 3: default path (bf16 MXU operands), bf16 output, ragged batch
    out3 = sccl_encoder_forward(embeddings2, w1, b1, w2, b2,
                                out_dtype=jnp.bfloat16)
    out3 = jax.block_until_ready(out3)
    assert out3.shape == (batch2, proj_dim)
    assert jnp.allclose(out3.astype(jnp.float32), ref2, atol=5e-2), \
        "bf16 path mismatch vs f32 reference"
    assert jnp.allclose(jnp.linalg.norm(out3.astype(jnp.float32), axis=-1),
                        1.0, atol=3e-2)

    print("KERNEL_OK")
</pallas_src>

<mosaic_0001>
module attributes {stable_mosaic.version = 11 : i64} {
  func.func @_sccl_projector_kernel(%arg0: i32, %arg1: memref<8x1024xf32, #tpu.memory_space<vmem>>, %arg2: memref<1024x128xf32, #tpu.memory_space<vmem>>, %arg3: memref<1x128xf32, #tpu.memory_space<vmem>>, %arg4: memref<128x128xf32, #tpu.memory_space<vmem>>, %arg5: memref<1x128xf32, #tpu.memory_space<vmem>>, %arg6: memref<8x128xf32, #tpu.memory_space<vmem>>) attributes {dimension_semantics = [#tpu.dimension_semantics<parallel>], iteration_bounds = array<i64: 1>, scalar_prefetch = 0 : i64, scratch_operands = 0 : i64, tpu.core_type = #tpu.core_type<tc>, window_params = [{transform_indices = @transform_0, window_bounds = array<i64: 8, 1024>}, {pipeline_mode = #tpu.pipeline_mode<synchronous>, transform_indices = @transform_1, window_bounds = array<i64: 1024, 128>}, {pipeline_mode = #tpu.pipeline_mode<synchronous>, transform_indices = @transform_2, window_bounds = array<i64: 1, 128>}, {pipeline_mode = #tpu.pipeline_mode<synchronous>, transform_indices = @transform_3, window_bounds = array<i64: 128, 128>}, {pipeline_mode = #tpu.pipeline_mode<synchronous>, transform_indices = @transform_4, window_bounds = array<i64: 1, 128>}, {transform_indices = @transform_5, window_bounds = array<i64: 8, 128>}]} {
    %c0 = arith.constant 0 : index
    %c0_0 = arith.constant 0 : index
    %0 = vector.load %arg1[%c0, %c0_0] : memref<8x1024xf32, #tpu.memory_space<vmem>>, vector<8x1024xf32>
    %c0_1 = arith.constant 0 : index
    %c0_2 = arith.constant 0 : index
    %1 = vector.load %arg2[%c0_1, %c0_2] : memref<1024x128xf32, #tpu.memory_space<vmem>>, vector<1024x128xf32>
    %cst = arith.constant dense<0.000000e+00> : vector<8x128xf32>
    %2 = tpu.matmul %0, %1, %cst {dimension_numbers = #tpu.dot_dimension_numbers<[1], [0], [0], [1], [0, 0, 1, 1], [], []>} : vector<8x1024xf32>, vector<1024x128xf32>, vector<8x128xf32> -> vector<8x128xf32>
    %c0_3 = arith.constant 0 : index
    %c0_4 = arith.constant 0 : index
    %3 = vector.load %arg3[%c0_3, %c0_4] : memref<1x128xf32, #tpu.memory_space<vmem>>, vector<1x128xf32>
    %4 = vector.broadcast %3 : vector<1x128xf32> to vector<8x128xf32>
    %5 = arith.addf %2, %4 : vector<8x128xf32>
    %cst_5 = arith.constant 0.000000e+00 : f32
    %6 = vector.broadcast %cst_5 : f32 to vector<8x128xf32>
    %7 = arith.maximumf %5, %6 : vector<8x128xf32>
    %c0_6 = arith.constant 0 : index
    %c0_7 = arith.constant 0 : index
    %8 = vector.load %arg4[%c0_6, %c0_7] : memref<128x128xf32, #tpu.memory_space<vmem>>, vector<128x128xf32>
    %cst_8 = arith.constant dense<0.000000e+00> : vector<8x128xf32>
    %9 = tpu.matmul %7, %8, %cst_8 {dimension_numbers = #tpu.dot_dimension_numbers<[1], [0], [0], [1], [0, 0, 1, 1], [], []>} : vector<8x128xf32>, vector<128x128xf32>, vector<8x128xf32> -> vector<8x128xf32>
    %c0_9 = arith.constant 0 : index
    %c0_10 = arith.constant 0 : index
    %10 = vector.load %arg5[%c0_9, %c0_10] : memref<1x128xf32, #tpu.memory_space<vmem>>, vector<1x128xf32>
    %11 = vector.broadcast %10 : vector<1x128xf32> to vector<8x128xf32>
    %12 = arith.addf %9, %11 : vector<8x128xf32>
    %13 = arith.mulf %12, %12 : vector<8x128xf32>
    %cst_11 = arith.constant dense<0.000000e+00> : vector<8xf32>
    %14 = vector.multi_reduction <add>, %13, %cst_11 [1] : vector<8x128xf32> to vector<8xf32>
    %15 = vector.shape_cast %14 : vector<8xf32> to vector<8x1xf32>
    %cst_12 = arith.constant 1.000000e-24 : f32
    %16 = vector.broadcast %cst_12 : f32 to vector<8x1xf32>
    %17 = arith.maximumf %15, %16 : vector<8x1xf32>
    %18 = math.rsqrt %17 : vector<8x1xf32>
    %19 = vector.broadcast %18 : vector<8x1xf32> to vector<8x128xf32>
    %20 = arith.mulf %12, %19 : vector<8x128xf32>
    %c0_13 = arith.constant 0 : index
    %c0_14 = arith.constant 0 : index
    %21 = vector.load %arg6[%c0_13, %c0_14] : memref<8x128xf32, #tpu.memory_space<vmem>>, vector<8x128xf32>
    tpu.vector_store %arg6[%c0_13, %c0_14], %20 {strides = array<i32>} : memref<8x128xf32, #tpu.memory_space<vmem>>, vector<8x128xf32>,
    return
  }
  func.func @transform_0(%arg0: i32) -> (i32, i32) {
    %c0_i32 = arith.constant 0 : i32
    %c0_i32_0 = arith.constant 0 : i32
    return %arg0, %c0_i32 : i32, i32
  }
  func.func @transform_1(%arg0: i32) -> (i32, i32) {
    %c0_i32 = arith.constant 0 : i32
    %c0_i32_0 = arith.constant 0 : i32
    %c0_i32_1 = arith.constant 0 : i32
    return %c0_i32, %c0_i32_0 : i32, i32
  }
  func.func @transform_2(%arg0: i32) -> (i32, i32) {
    %c0_i32 = arith.constant 0 : i32
    %c0_i32_0 = arith.constant 0 : i32
    %c0_i32_1 = arith.constant 0 : i32
    return %c0_i32, %c0_i32_0 : i32, i32
  }
  func.func @transform_3(%arg0: i32) -> (i32, i32) {
    %c0_i32 = arith.constant 0 : i32
    %c0_i32_0 = arith.constant 0 : i32
    %c0_i32_1 = arith.constant 0 : i32
    return %c0_i32, %c0_i32_0 : i32, i32
  }
  func.func @transform_4(%arg0: i32) -> (i32, i32) {
    %c0_i32 = arith.constant 0 : i32
    %c0_i32_0 = arith.constant 0 : i32
    %c0_i32_1 = arith.constant 0 : i32
    return %c0_i32, %c0_i32_0 : i32, i32
  }
  func.func @transform_5(%arg0: i32) -> (i32, i32) {
    %c0_i32 = arith.constant 0 : i32
    %c0_i32_0 = arith.constant 0 : i32
    return %arg0, %c0_i32 : i32, i32
  }
}

</mosaic_0001>

<bundles_post_ra>
// kernel: tpu_custom_call.1
= control target key start
LH: loop header
LB: loop body
LE: loop exit
PB: predicated region body
PF: predicated region fallthrough
CT: control target
= control target key end

     0   :  { %10 = vsyncpa [#allocation3], 0  ;;  %s946_s0 = inlined_call_operand.hbm [shape: f32[8,1024], index: 0, kind: input, shape index: {}]   ;;  %s947_s1 = inlined_call_operand.hbm [shape: f32[1024,128], index: 1, kind: input, shape index: {}]   ;;  %s948_s2 = inlined_call_operand.vmem [shape: f32[1,128], index: 2, kind: input, shape index: {}]   ;;  %s949_s3 = inlined_call_operand.hbm [shape: f32[128,128], index: 3, kind: input, shape index: {}]   ;;  %s950_s4 = inlined_call_operand.vmem [shape: f32[1,128], index: 4, kind: input, shape index: {}]   ;;  %s951_s5 = inlined_call_operand.hbm [shape: f32[8,128], index: 5, kind: output, shape index: {}]  }
   0x1   :  { %11 = vsyncpa [#allocation6], 0 }
   0x2   :  { %12 = vsyncpa [#allocation4], 0  ;;  %s890_s18 = smov [#allocation5]  }
   0x3   :  { %s28_s19 = sshll.u32 %s890_s18, 4  ;;  %s29_s19 = int_to_ptr.vmem [resolvable:$true] %s28_s19 }
   0x4   :  { %s812_s20 = scalar_lea.vmem %s29_s19, 16384  ;;  %p817_p1 = scmp.lt.s32.totalorder %s29_s19, %s29_s19 }
   0x5   :  { %p813_p0 = scmp.ne.s32.totalorder %s29_s19, %s812_s20  ;;  %p818_p2 = scmp.lt.s32.totalorder %s812_s20, %s812_s20 }
   0x7   :  { %p819_p3 = por %p818_p2, %p817_p1 }
   0x9   :  { %p820_p4 = pnand %p819_p3, %p813_p0 }
   0xb   :  { %823 = shalt.err (!%p820_p4)
}
   0xc   :  { %s891_s21 = smov 128   ;;  %s892_s22 = smov 8  }
   0xd   :  { %34 = dma.hbm_to_vmem [thread:$0]  %s947_s1, 16384, %s29_s19, [#allocation6], %s891_s21, %s891_s21, %s892_s22  }
   0xe   :  { %s893_s25 = smov [#allocation2]   ;;  %s894_s27 = smov [#allocation7]  }
   0xf   :  { %s19_s26 = sshll.u32 %s893_s25, 4  ;;  %s42_s28 = sshll.u32 %s894_s27, 4  ;;  %s20_s26 = int_to_ptr.vmem [resolvable:$true] %s19_s26  ;;  %s43_s28 = int_to_ptr.vmem [resolvable:$true] %s42_s28 }
  0x10   :  { %s832_s29 = scalar_lea.vmem %s20_s26, 1024  ;;  %p837_p6 = scmp.lt.s32.totalorder %s20_s26, %s20_s26 }
  0x11   :  { %p833_p5 = scmp.ne.s32.totalorder %s20_s26, %s832_s29  ;;  %p838_p7 = scmp.lt.s32.totalorder %s832_s29, %s832_s29 }
  0x13   :  { %p839_p8 = por %p838_p7, %p837_p6 }
  0x15   :  { %p840_p9 = pnand %p839_p8, %p833_p5 }
  0x17   :  { %843 = shalt.err (!%p840_p9)
}
  0x18   :  { %22 = dma.hbm_to_vmem [thread:$0]  %s946_s0, 1024, %s20_s26, [#allocation3]  }
  0x19   :  { %s852_s7 = scalar_lea.vmem %s43_s28, 2048  ;;  %p857_p11 = scmp.lt.s32.totalorder %s43_s28, %s43_s28 }
  0x1a   :  { %p853_p10 = scmp.ne.s32.totalorder %s43_s28, %s852_s7  ;;  %p858_p12 = scmp.lt.s32.totalorder %s852_s7, %s852_s7 }
  0x1c   :  { %p859_p13 = por %p858_p12, %p857_p11 }
  0x1e   :  { %p860_p0 = pnand %p859_p13, %p853_p10 }
  0x20   :  { %863 = shalt.err (!%p860_p0)
}
  0x21   :  { %48 = dma.hbm_to_vmem [thread:$0]  %s949_s3, 2048, %s43_s28, [#allocation6], %s891_s21, %s891_s21, %s892_s22  }
  0x22   :  { %884 = dma.done.wait [#allocation3], 1024  }
  0x23   :  { %885 = vsyncadd [#allocation3], 4294966272 }
  0x24   :  { %886 = dma.done.wait [#allocation6], 18432  }
  0x25   :  { %887 = vsyncadd [#allocation6], 4294948864  ;;  %v99_v0 = vld [vmem:[#allocation5 + $0xf8] sm:$0xff]  ;;  %v98_v4 = vld [vmem:[#allocation5 + $0xf0] sm:$0xff]  ;;  %vm896_vm0 = vmmov 0  }
  0x26   :  { %v131_v1 = vld [vmem:[#allocation5 + $0x1f8] sm:$0xff]  ;;  %602 = vmatprep.subr.mxu0 %v99_v0  ;;  %v130_v5 = vld [vmem:[#allocation5 + $0x1f0] sm:$0xff]  ;;  %v97_v8 = vld [vmem:[#allocation5 + $0xe8] sm:$0xff] }
  0x27   :  { %v83_v2 = vld [vmem:[#allocation5 + $0x78] sm:$0xff]  ;;  %637 = vmatprep.subr.mxu1 %v131_v1  ;;  %v82_v6 = vld [vmem:[#allocation5 + $0x70] sm:$0xff]  ;;  %v129_v9 = vld [vmem:[#allocation5 + $0x1e8] sm:$0xff] }
  0x28   :  { %v115_v3 = vld [vmem:[#allocation5 + $0x178] sm:$0xff]  ;;  %603 = vmatpush3.msra.mxu0 %v83_v2  ;;  %v114_v7 = vld [vmem:[#allocation5 + $0x170] sm:$0xff]  ;;  %v81_v10 = vld [vmem:[#allocation5 + $0x68] sm:$0xff] }
  0x29   :  { %638 = vmatpush3.msra.mxu1 %v115_v3  ;;  %604 = vmatprep.subr.mxu0 %v98_v4  ;;  %v113_v11 = vld [vmem:[#allocation5 + $0x168] sm:$0xff]  ;;  %v96_v12 = vld [vmem:[#allocation5 + $0xe0] sm:$0xff]  ;;  %v95_v16 = vld [vmem:[#allocation5 + $0xd8] sm:$0xff] }
  0x2a   :  { %639 = vmatprep.subr.mxu1 %v130_v5  ;;  %605 = vmatpush3.msra.mxu0 %v82_v6  ;;  %v128_v13 = vld [vmem:[#allocation5 + $0x1e0] sm:$0xff]  ;;  %v127_v17 = vld [vmem:[#allocation5 + $0x1d8] sm:$0xff]  ;;  %v94_v20 = vld [vmem:[#allocation5 + $0xd0] sm:$0xff] }
  0x2b   :  { %640 = vmatpush3.msra.mxu1 %v114_v7  ;;  %606 = vmatprep.subr.mxu0 %v97_v8  ;;  %v80_v14 = vld [vmem:[#allocation5 + $0x60] sm:$0xff]  ;;  %v79_v18 = vld [vmem:[#allocation5 + $0x58] sm:$0xff]  ;;  %v126_v21 = vld [vmem:[#allocation5 + $0x1d0] sm:$0xff] }
  0x2c   :  { %641 = vmatprep.subr.mxu1 %v129_v9  ;;  %v112_v15 = vld [vmem:[#allocation5 + $0x160] sm:$0xff]  ;;  %607 = vmatpush3.msra.mxu0 %v81_v10  ;;  %v111_v19 = vld [vmem:[#allocation5 + $0x158] sm:$0xff]  ;;  %v78_v22 = vld [vmem:[#allocation5 + $0x50] sm:$0xff] }
  0x2d   :  { %642 = vmatpush3.msra.mxu1 %v113_v11  ;;  %608 = vmatprep.subr.mxu0 %v96_v12  ;;  %v110_v23 = vld [vmem:[#allocation5 + $0x150] sm:$0xff]  ;;  %v93_v24 = vld [vmem:[#allocation5 + $0xc8] sm:$0xff]  ;;  %v92_v28 = vld [vmem:[#allocation5 + $0xc0] sm:$0xff] }
  0x2e   :  { %643 = vmatprep.subr.mxu1 %v128_v13  ;;  %609 = vmatpush3.msra.mxu0 %v80_v14  ;;  %v125_v25 = vld [vmem:[#allocation5 + $0x1c8] sm:$0xff]  ;;  %v124_v29 = vld [vmem:[#allocation5 + $0x1c0] sm:$0xff]  ;;  %v91_v32 = vld [vmem:[#allocation5 + $0xb8] sm:$0xff] }
  0x2f   :  { %644 = vmatpush3.msra.mxu1 %v112_v15  ;;  %610 = vmatprep.subr.mxu0 %v95_v16  ;;  %v77_v26 = vld [vmem:[#allocation5 + $0x48] sm:$0xff]  ;;  %v76_v30 = vld [vmem:[#allocation5 + $0x40] sm:$0xff]  ;;  %v123_v33 = vld [vmem:[#allocation5 + $0x1b8] sm:$0xff] }
  0x30   :  { %645 = vmatprep.subr.mxu1 %v127_v17  ;;  %611 = vmatpush3.msra.mxu0 %v79_v18  ;;  %v109_v27 = vld [vmem:[#allocation5 + $0x148] sm:$0xff]  ;;  %v108_v31 = vld [vmem:[#allocation5 + $0x140] sm:$0xff]  ;;  %v75_v34 = vld [vmem:[#allocation5 + $0x38] sm:$0xff] }
  0x31   :  { %646 = vmatpush3.msra.mxu1 %v111_v19  ;;  %612 = vmatprep.subr.mxu0 %v94_v20  ;;  %v107_v35 = vld [vmem:[#allocation5 + $0x138] sm:$0xff]  ;;  %v90_v36 = vld [vmem:[#allocation5 + $0xb0] sm:$0xff]  ;;  %v89_v40 = vld [vmem:[#allocation5 + $0xa8] sm:$0xff] }
  0x32   :  { %647 = vmatprep.subr.mxu1 %v126_v21  ;;  %613 = vmatpush3.msra.mxu0 %v78_v22  ;;  %v122_v37 = vld [vmem:[#allocation5 + $0x1b0] sm:$0xff]  ;;  %v121_v41 = vld [vmem:[#allocation5 + $0x1a8] sm:$0xff]  ;;  %v88_v44 = vld [vmem:[#allocation5 + $0xa0] sm:$0xff] }
  0x33   :  { %648 = vmatpush3.msra.mxu1 %v110_v23  ;;  %614 = vmatprep.subr.mxu0 %v93_v24  ;;  %v74_v38 = vld [vmem:[#allocation5 + $0x30] sm:$0xff]  ;;  %v73_v42 = vld [vmem:[#allocation5 + $0x28] sm:$0xff]  ;;  %v120_v45 = vld [vmem:[#allocation5 + $0x1a0] sm:$0xff] }
  0x34   :  { %649 = vmatprep.subr.mxu1 %v125_v25  ;;  %615 = vmatpush3.msra.mxu0 %v77_v26  ;;  %v106_v39 = vld [vmem:[#allocation5 + $0x130] sm:$0xff]  ;;  %v105_v43 = vld [vmem:[#allocation5 + $0x128] sm:$0xff]  ;;  %v72_v46 = vld [vmem:[#allocation5 + $0x20] sm:$0xff] }
  0x35   :  { %650 = vmatpush3.msra.mxu1 %v109_v27  ;;  %616 = vmatprep.subr.mxu0 %v92_v28  ;;  %v104_v47 = vld [vmem:[#allocation5 + $0x120] sm:$0xff]  ;;  %v87_v48 = vld [vmem:[#allocation5 + $0x98] sm:$0xff]  ;;  %v86_v52 = vld [vmem:[#allocation5 + $0x90] sm:$0xff] }
  0x36   :  { %651 = vmatprep.subr.mxu1 %v124_v29  ;;  %617 = vmatpush3.msra.mxu0 %v76_v30  ;;  %v119_v49 = vld [vmem:[#allocation5 + $0x198] sm:$0xff]  ;;  %v118_v53 = vld [vmem:[#allocation5 + $0x190] sm:$0xff]  ;;  %v85_v56 = vld [vmem:[#allocation5 + $0x88] sm:$0xff] }
  0x37   :  { %652 = vmatpush3.msra.mxu1 %v108_v31  ;;  %618 = vmatprep.subr.mxu0 %v91_v32  ;;  %v71_v50 = vld [vmem:[#allocation5 + $0x18] sm:$0xff]  ;;  %v70_v54 = vld [vmem:[#allocation5 + $0x10] sm:$0xff]  ;;  %v117_v57 = vld [vmem:[#allocation5 + $0x188] sm:$0xff] }
  0x38   :  { %653 = vmatprep.subr.mxu1 %v123_v33  ;;  %619 = vmatpush3.msra.mxu0 %v75_v34  ;;  %v103_v51 = vld [vmem:[#allocation5 + $0x118] sm:$0xff]  ;;  %v102_v55 = vld [vmem:[#allocation5 + $0x110] sm:$0xff]  ;;  %v69_v58 = vld [vmem:[#allocation5 + $0x8] sm:$0xff] }
  0x39   :  { %654 = vmatpush3.msra.mxu1 %v107_v35  ;;  %620 = vmatprep.subr.mxu0 %v90_v36  ;;  %v101_v59 = vld [vmem:[#allocation5 + $0x108] sm:$0xff]  ;;  %v84_v60 = vld [vmem:[#allocation5 + $0x80] sm:$0xff]  ;;  %v63_v2 = vld [vmem:[#allocation2 + $0x18] sm:$0xff] }
  0x3a   :  { %655 = vmatprep.subr.mxu1 %v122_v37  ;;  %621 = vmatpush3.msra.mxu0 %v74_v38  ;;  %v116_v61 = vld [vmem:[#allocation5 + $0x180] sm:$0xff]  ;;  %v61_v63 = vld [vmem:[#allocation2 + $0x8] sm:$0xff]  ;;  %v163_v3 = vld [vmem:[#allocation5 + $0x2f8] sm:$0xff] }
  0x3b   :  { %656 = vmatpush3.msra.mxu1 %v106_v39  ;;  %622 = vmatprep.subr.mxu0 %v89_v40  ;;  %v68_v62 = vld [vmem:[#allocation5] sm:$0xff]  ;;  %v195_v4 = vld [vmem:[#allocation5 + $0x3f8] sm:$0xff]  ;;  %v62_v5 = vld [vmem:[#allocation2 + $0x10] sm:$0xff] }
  0x3c   :  { %657 = vmatprep.subr.mxu1 %v121_v41  ;;  %623 = vmatpush3.msra.mxu0 %v73_v42  ;;  %v100_v0 = vld [vmem:[#allocation5 + $0x100] sm:$0xff]  ;;  %v147_v6 = vld [vmem:[#allocation5 + $0x278] sm:$0xff]  ;;  %v162_v8 = vld [vmem:[#allocation5 + $0x2f0] sm:$0xff] }
  0x3d   :  { %658 = vmatpush3.msra.mxu1 %v105_v43  ;;  %624 = vmatprep.subr.mxu0 %v88_v44  ;;  %v60_v1 = vld [vmem:[#allocation2] sm:$0xff]  ;;  %v179_v7 = vld [vmem:[#allocation5 + $0x378] sm:$0xff]  ;;  %v194_v9 = vld [vmem:[#allocation5 + $0x3f0] sm:$0xff] }
  0x3e   :  { %659 = vmatprep.subr.mxu1 %v120_v45  ;;  %625 = vmatpush3.msra.mxu0 %v72_v46  ;;  %v146_v10 = vld [vmem:[#allocation5 + $0x270] sm:$0xff]  ;;  %v161_v12 = vld [vmem:[#allocation5 + $0x2e8] sm:$0xff]  ;;  %v160_v16 = vld [vmem:[#allocation5 + $0x2e0] sm:$0xff] }
  0x3f   :  { %660 = vmatpush3.msra.mxu1 %v104_v47  ;;  %626 = vmatprep.subr.mxu0 %v87_v48  ;;  %v178_v11 = vld [vmem:[#allocation5 + $0x370] sm:$0xff]  ;;  %v193_v13 = vld [vmem:[#allocation5 + $0x3e8] sm:$0xff]  ;;  %v192_v17 = vld [vmem:[#allocation5 + $0x3e0] sm:$0xff] }
  0x40   :  { %661 = vmatprep.subr.mxu1 %v119_v49  ;;  %627 = vmatpush3.msra.mxu0 %v71_v50  ;;  %v145_v14 = vld [vmem:[#allocation5 + $0x268] sm:$0xff]  ;;  %v144_v18 = vld [vmem:[#allocation5 + $0x260] sm:$0xff]  ;;  %v159_v20 = vld [vmem:[#allocation5 + $0x2d8] sm:$0xff] }
  0x41   :  { %662 = vmatpush3.msra.mxu1 %v103_v51  ;;  %628 = vmatprep.subr.mxu0 %v86_v52  ;;  %v177_v15 = vld [vmem:[#allocation5 + $0x368] sm:$0xff]  ;;  %v176_v19 = vld [vmem:[#allocation5 + $0x360] sm:$0xff]  ;;  %v191_v21 = vld [vmem:[#allocation5 + $0x3d8] sm:$0xff] }
  0x42   :  { %663 = vmatprep.subr.mxu1 %v118_v53  ;;  %629 = vmatpush3.msra.mxu0 %v70_v54  ;;  %v143_v22 = vld [vmem:[#allocation5 + $0x258] sm:$0xff]  ;;  %v158_v24 = vld [vmem:[#allocation5 + $0x2d0] sm:$0xff]  ;;  %v157_v28 = vld [vmem:[#allocation5 + $0x2c8] sm:$0xff] }
  0x43   :  { %664 = vmatpush3.msra.mxu1 %v102_v55  ;;  %630 = vmatprep.subr.mxu0 %v85_v56  ;;  %v175_v23 = vld [vmem:[#allocation5 + $0x358] sm:$0xff]  ;;  %v190_v25 = vld [vmem:[#allocation5 + $0x3d0] sm:$0xff]  ;;  %v189_v29 = vld [vmem:[#allocation5 + $0x3c8] sm:$0xff] }
  0x44   :  { %665 = vmatprep.subr.mxu1 %v117_v57  ;;  %631 = vmatpush3.msra.mxu0 %v69_v58  ;;  %v142_v26 = vld [vmem:[#allocation5 + $0x250] sm:$0xff]  ;;  %v141_v30 = vld [vmem:[#allocation5 + $0x248] sm:$0xff]  ;;  %v156_v32 = vld [vmem:[#allocation5 + $0x2c0] sm:$0xff] }
  0x45   :  { %666 = vmatpush3.msra.mxu1 %v101_v59  ;;  %632 = vmatprep.subr.mxu0 %v84_v60  ;;  %v174_v27 = vld [vmem:[#allocation5 + $0x350] sm:$0xff]  ;;  %v173_v31 = vld [vmem:[#allocation5 + $0x348] sm:$0xff]  ;;  %v188_v33 = vld [vmem:[#allocation5 + $0x3c0] sm:$0xff] }
  0x46   :  { %667 = vmatprep.subr.mxu1 %v116_v61  ;;  %633 = vmatpush3.msra.mxu0 %v68_v62  ;;  %v140_v34 = vld [vmem:[#allocation5 + $0x240] sm:$0xff]  ;;  %v155_v36 = vld [vmem:[#allocation5 + $0x2b8] sm:$0xff]  ;;  %v154_v40 = vld [vmem:[#allocation5 + $0x2b0] sm:$0xff] }
  0x47   :  { %267 = vmatprep.mubr.f32.mxu0 %v61_v63  ;;  %668 = vmatpush3.msra.mxu1 %v100_v0  ;;  %v172_v35 = vld [vmem:[#allocation5 + $0x340] sm:$0xff]  ;;  %v187_v37 = vld [vmem:[#allocation5 + $0x3b8] sm:$0xff]  ;;  %v186_v41 = vld [vmem:[#allocation5 + $0x3b0] sm:$0xff] }
  0x48   :  { %268 = vmatmul.mubr.f32.vlgmr.msra.gmra.mxu0 %v60_v1  ;;  %337 = vmatprep.mubr.f32.mxu1 %v63_v2  ;;  %v139_v38 = vld [vmem:[#allocation5 + $0x238] sm:$0xff]  ;;  %v138_v42 = vld [vmem:[#allocation5 + $0x230] sm:$0xff]  ;;  %v153_v44 = vld [vmem:[#allocation5 + $0x2a8] sm:$0xff] }
  0x49   :  { %672 = vmatprep.subr.mxu0 %v163_v3  ;;  %707 = vmatprep.subr.mxu1 %v195_v4  ;;  %v171_v39 = vld [vmem:[#allocation5 + $0x338] sm:$0xff]  ;;  %v170_v43 = vld [vmem:[#allocation5 + $0x330] sm:$0xff]  ;;  %v185_v45 = vld [vmem:[#allocation5 + $0x3a8] sm:$0xff] }
  0x4a   :  { %338 = vmatmul.mubr.f32.vlgmr.msra.gmra.mxu1 %v62_v5  ;;  %673 = vmatpush3.msra.mxu0 %v147_v6  ;;  %v137_v46 = vld [vmem:[#allocation5 + $0x228] sm:$0xff]  ;;  %v152_v48 = vld [vmem:[#allocation5 + $0x2a0] sm:$0xff]  ;;  %v151_v52 = vld [vmem:[#allocation5 + $0x298] sm:$0xff] }
  0x4b   :  { %708 = vmatpush3.msra.mxu1 %v179_v7  ;;  %674 = vmatprep.subr.mxu0 %v162_v8  ;;  %v169_v47 = vld [vmem:[#allocation5 + $0x328] sm:$0xff]  ;;  %v184_v49 = vld [vmem:[#allocation5 + $0x3a0] sm:$0xff]  ;;  %v183_v53 = vld [vmem:[#allocation5 + $0x398] sm:$0xff] }
  0x4c   :  { %709 = vmatprep.subr.mxu1 %v194_v9  ;;  %675 = vmatpush3.msra.mxu0 %v146_v10  ;;  %v136_v50 = vld [vmem:[#allocation5 + $0x220] sm:$0xff]  ;;  %v135_v54 = vld [vmem:[#allocation5 + $0x218] sm:$0xff]  ;;  %v150_v56 = vld [vmem:[#allocation5 + $0x290] sm:$0xff]  ;;  %v895_v9 = vmov 0.0  }
  0x4d   :  { %710 = vmatpush3.msra.mxu1 %v178_v11  ;;  %676 = vmatprep.subr.mxu0 %v161_v12  ;;  %v168_v51 = vld [vmem:[#allocation5 + $0x320] sm:$0xff]  ;;  %v167_v55 = vld [vmem:[#allocation5 + $0x318] sm:$0xff]  ;;  %v182_v57 = vld [vmem:[#allocation5 + $0x390] sm:$0xff] }
  0x4e   :  { %711 = vmatprep.subr.mxu1 %v193_v13  ;;  %677 = vmatpush3.msra.mxu0 %v145_v14  ;;  %v134_v58 = vld [vmem:[#allocation5 + $0x210] sm:$0xff]  ;;  %v149_v60 = vld [vmem:[#allocation5 + $0x288] sm:$0xff]  ;;  %v148_v0 = vld [vmem:[#allocation5 + $0x280] sm:$0xff] }
  0x4f   :  { %712 = vmatpush3.msra.mxu1 %v177_v15  ;;  %678 = vmatprep.subr.mxu0 %v160_v16  ;;  %v166_v59 = vld [vmem:[#allocation5 + $0x310] sm:$0xff]  ;;  %v181_v61 = vld [vmem:[#allocation5 + $0x388] sm:$0xff]  ;;  %v180_v1 = vld [vmem:[#allocation5 + $0x380] sm:$0xff] }
  0x50   :  { %713 = vmatprep.subr.mxu1 %v192_v17  ;;  %679 = vmatpush3.msra.mxu0 %v144_v18  ;;  %v133_v62 = vld [vmem:[#allocation5 + $0x208] sm:$0xff]  ;;  %v132_v2 = vld [vmem:[#allocation5 + $0x200] sm:$0xff]  ;;  %v67_v5 = vld [vmem:[#allocation2 + $0x38] sm:$0xff] }
  0x51   :  { %714 = vmatpush3.msra.mxu1 %v176_v19  ;;  %680 = vmatprep.subr.mxu0 %v159_v20  ;;  %v165_v63 = vld [vmem:[#allocation5 + $0x308] sm:$0xff]  ;;  %v164_v4 = vld [vmem:[#allocation5 + $0x300] sm:$0xff]  ;;  %v66_v7 = vld [vmem:[#allocation2 + $0x30] sm:$0xff] }
  0x52   :  { %715 = vmatprep.subr.mxu1 %v191_v21  ;;  %681 = vmatpush3.msra.mxu0 %v143_v22  ;;  %v65_v3 = vld [vmem:[#allocation2 + $0x28] sm:$0xff]  ;;  %v64_v6 = vld [vmem:[#allocation2 + $0x20] sm:$0xff]  ;;  %v499_v8 = vld [vmem:[#allocation7 + $0x78] sm:$0xff] }
  0x53   :  { %716 = vmatpush3.msra.mxu1 %v175_v23  ;;  %682 = vmatprep.subr.mxu0 %v158_v24  ;;  %v498_v10 = vld [vmem:[#allocation7 + $0x70] sm:$0xff]  ;;  %v497_v11 = vld [vmem:[#allocation7 + $0x68] sm:$0xff]  ;;  %v496_v12 = vld [vmem:[#allocation7 + $0x60] sm:$0xff] }
  0x54   :  { %717 = vmatprep.subr.mxu1 %v190_v25  ;;  %683 = vmatpush3.msra.mxu0 %v142_v26  ;;  %v495_v13 = vld [vmem:[#allocation7 + $0x58] sm:$0xff]  ;;  %v494_v14 = vld [vmem:[#allocation7 + $0x50] sm:$0xff]  ;;  %v493_v15 = vld [vmem:[#allocation7 + $0x48] sm:$0xff] }
  0x55   :  { %718 = vmatpush3.msra.mxu1 %v174_v27  ;;  %684 = vmatprep.subr.mxu0 %v157_v28  ;;  %v492_v16 = vld [vmem:[#allocation7 + $0x40] sm:$0xff]  ;;  %v491_v17 = vld [vmem:[#allocation7 + $0x38] sm:$0xff]  ;;  %v490_v18 = vld [vmem:[#allocation7 + $0x30] sm:$0xff] }
  0x56   :  { %719 = vmatprep.subr.mxu1 %v189_v29  ;;  %685 = vmatpush3.msra.mxu0 %v141_v30  ;;  %v489_v19 = vld [vmem:[#allocation7 + $0x28] sm:$0xff]  ;;  %v488_v20 = vld [vmem:[#allocation7 + $0x20] sm:$0xff]  ;;  %v487_v21 = vld [vmem:[#allocation7 + $0x18] sm:$0xff] }
  0x57   :  { %720 = vmatpush3.msra.mxu1 %v173_v31  ;;  %686 = vmatprep.subr.mxu0 %v156_v32  ;;  %v486_v22 = vld [vmem:[#allocation7 + $0x10] sm:$0xff]  ;;  %v485_v23 = vld [vmem:[#allocation7 + $0x8] sm:$0xff]  ;;  %v484_v24 = vld [vmem:[#allocation7] sm:$0xff] }
  0x58   :  { %721 = vmatprep.subr.mxu1 %v188_v33  ;;  %687 = vmatpush3.msra.mxu0 %v140_v34  ;;  %v600_v29 = vld [vmem:[%s948_s2] ss:$0 sm:$0xff]  ;;  %s897_s2 = smov [#allocation8]  }
  0x59   :  { %722 = vmatpush3.msra.mxu1 %v172_v35  ;;  %688 = vmatprep.subr.mxu0 %v155_v36  ;;  %s590_s11 = sshll.u32 %s897_s2, 4  ;;  %s591_s11 = int_to_ptr.vmem [resolvable:$true] %s590_s11 }
  0x5a   :  { %723 = vmatprep.subr.mxu1 %v187_v37  ;;  %689 = vmatpush3.msra.mxu0 %v139_v38  ;;  %s864_s12 = scalar_lea.vmem %s591_s11, 128  ;;  %p869_p2 = scmp.lt.s32.totalorder %s591_s11, %s591_s11 }
  0x5b   :  { %724 = vmatpush3.msra.mxu1 %v171_v39  ;;  %690 = vmatprep.subr.mxu0 %v154_v40  ;;  %p865_p1 = scmp.ne.s32.totalorder %s591_s11, %s864_s12  ;;  %p870_p3 = scmp.lt.s32.totalorder %s864_s12, %s864_s12 }
  0x5c   :  { %725 = vmatprep.subr.mxu1 %v186_v41  ;;  %691 = vmatpush3.msra.mxu0 %v138_v42 }
  0x5d   :  { %726 = vmatpush3.msra.mxu1 %v170_v43  ;;  %692 = vmatprep.subr.mxu0 %v153_v44  ;;  %v601_v43 = vld [vmem:[%s950_s4] ss:$0 sm:$0xff]  ;;  %p871_p4 = por %p870_p3, %p869_p2 }
  0x5e   :  { %727 = vmatprep.subr.mxu1 %v185_v45  ;;  %693 = vmatpush3.msra.mxu0 %v137_v46 }
  0x5f   :  { %728 = vmatpush3.msra.mxu1 %v169_v47  ;;  %694 = vmatprep.subr.mxu0 %v152_v48  ;;  %p872_p5 = pnand %p871_p4, %p865_p1 }
  0x60   :  { %729 = vmatprep.subr.mxu1 %v184_v49  ;;  %695 = vmatpush3.msra.mxu0 %v136_v50 }
  0x61   :  { %730 = vmatpush3.msra.mxu1 %v168_v51  ;;  %696 = vmatprep.subr.mxu0 %v151_v52 }
  0x62   :  { %731 = vmatprep.subr.mxu1 %v183_v53  ;;  %697 = vmatpush3.msra.mxu0 %v135_v54 }
  0x63   :  { %732 = vmatpush3.msra.mxu1 %v167_v55  ;;  %698 = vmatprep.subr.mxu0 %v150_v56 }
  0x64   :  { %733 = vmatprep.subr.mxu1 %v182_v57  ;;  %699 = vmatpush3.msra.mxu0 %v134_v58 }
  0x65   :  { %734 = vmatpush3.msra.mxu1 %v166_v59  ;;  %700 = vmatprep.subr.mxu0 %v149_v60 }
  0x66   :  { %735 = vmatprep.subr.mxu1 %v181_v61  ;;  %701 = vmatpush3.msra.mxu0 %v133_v62 }
  0x67   :  { %736 = vmatpush3.msra.mxu1 %v165_v63  ;;  %702 = vmatprep.subr.mxu0 %v148_v0 }
  0x68   :  { %737 = vmatprep.subr.mxu1 %v180_v1  ;;  %703 = vmatpush3.msra.mxu0 %v132_v2 }
  0x69   :  { %407 = vmatprep.mubr.f32.mxu0 %v65_v3  ;;  %738 = vmatpush3.msra.mxu1 %v164_v4 }
  0x6a   :  { %477 = vmatprep.mubr.f32.mxu1 %v67_v5  ;;  %408 = vmatmul.mubr.f32.vlgmr.msra.gmra.mxu0 %v64_v6 }
  0x6b   :  { %478 = vmatmul.mubr.f32.vlgmr.msra.gmra.mxu1 %v66_v7  ;;  %759 = vmatprep.subr.mxu0 %v895_v9 }
  0x6c   :  { %760 = vmatpush3.msra.mxu0 %v499_v8  ;;  %791 = vmatprep.mubr.msk.f32.mxu0 %vm896_vm0, %v895_v9 }
  0x6d   :  { %761 = vmatprep.subr.mxu0 %v895_v9 }
  0x6e   :  { %762 = vmatpush3.msra.mxu0 %v498_v10 }
  0x6f   :  { %763 = vmatprep.subr.mxu0 %v895_v9 }
  0x70   :  { %764 = vmatpush3.msra.mxu0 %v497_v11 }
  0x71   :  { %765 = vmatprep.subr.mxu0 %v895_v9 }
  0x72   :  { %766 = vmatpush3.msra.mxu0 %v496_v12 }
  0x73   :  { %767 = vmatprep.subr.mxu0 %v895_v9 }
  0x74   :  { %768 = vmatpush3.msra.mxu0 %v495_v13 }
  0x75   :  { %769 = vmatprep.subr.mxu0 %v895_v9 }
  0x76   :  { %770 = vmatpush3.msra.mxu0 %v494_v14 }
  0x77   :  { %771 = vmatprep.subr.mxu0 %v895_v9 }
  0x78   :  { %772 = vmatpush3.msra.mxu0 %v493_v15 }
  0x79   :  { %773 = vmatprep.subr.mxu0 %v895_v9 }
  0x7a   :  { %774 = vmatpush3.msra.mxu0 %v492_v16 }
  0x7b   :  { %775 = vmatprep.subr.mxu0 %v895_v9 }
  0x7c   :  { %776 = vmatpush3.msra.mxu0 %v491_v17 }
  0x7d   :  { %777 = vmatprep.subr.mxu0 %v895_v9 }
  0x7e   :  { %778 = vmatpush3.msra.mxu0 %v490_v18 }
  0x7f   :  { %779 = vmatprep.subr.mxu0 %v895_v9 }
  0x80   :  { %780 = vmatpush3.msra.mxu0 %v489_v19 }
  0x81   :  { %781 = vmatprep.subr.mxu0 %v895_v9 }
  0x82   :  { %782 = vmatpush3.msra.mxu0 %v488_v20 }
  0x83   :  { %783 = vmatprep.subr.mxu0 %v895_v9 }
  0x84   :  { %784 = vmatpush3.msra.mxu0 %v487_v21 }
  0x85   :  { %785 = vmatprep.subr.mxu0 %v895_v9 }
  0x86   :  { %786 = vmatpush3.msra.mxu0 %v486_v22 }
  0x87   :  { %787 = vmatprep.subr.mxu0 %v895_v9 }
  0x88   :  { %788 = vmatpush3.msra.mxu0 %v485_v23 }
  0x89   :  { %789 = vmatprep.subr.mxu0 %v895_v9 }
  0x8a   :  { %790 = vmatpush3.msra.mxu0 %v484_v24 }
 0x108   :  { %v634_v25 = vpop.f32.mrf.mxu0 }
 0x10a   :  { %v669_v26 = vpop.f32.mrf.mxu1  ;;  %v635_v27 = vpop.f32.mrf.mxu0 }
 0x10b   :  { %v636_v28 = vadd.f32 %v635_v27, %v634_v25 }
 0x10c   :  { %v670_v30 = vpop.f32.mrf.mxu1 }
 0x10d   :  { %v270_v31 = vadd.f32 %v636_v28, %v600_v29  ;;  %v671_v32 = vadd.f32 %v670_v30, %v669_v26 }
 0x10f   :  { %v340_v37 = vadd.f32 %v671_v32, %v270_v31 }
 0x12a   :  { %v704_v33 = vpop.f32.mrf.mxu0 }
 0x12b   :  { %v739_v34 = vpop.f32.mrf.mxu1 }
 0x12c   :  { %v705_v35 = vpop.f32.mrf.mxu0 }
 0x12d   :  { %v740_v36 = vpop.f32.mrf.mxu1  ;;  %v706_v38 = vadd.f32 %v705_v35, %v704_v33 }
 0x12e   :  { %v741_v40 = vadd.f32 %v740_v36, %v739_v34 }
 0x12f   :  { %v410_v39 = vadd.f32 %v706_v38, %v340_v37 }
 0x131   :  { %v480_v41 = vadd.f32 %v741_v40, %v410_v39 }
 0x133   :  { %v483_v42 = vmax.f32 %v480_v41, 0.0 }
 0x135   :  { %792 = vmatmul.mubr.f32.vlgmr.msra.gmra.mxu0 %v483_v42 }
 0x1f5   :  { %v573_v44 = vpop.f32.mrf.mxu0 }
 0x1f6   :  { %v574_v45 = vadd.f32 %v601_v43, %v573_v44 }
 0x1f7   :  { %v793_v46 = vpop.f32.mrf.mxu0 }
 0x1f8   :  { %v577_v47 = vmul.f32 %v574_v45, %v574_v45 }
 0x1fa   :  { %578 = vadd.xlane.f32.xlu0 %v577_v47 }
 0x283   :  { %v579_v48 = vpop.xlane.xlu0 %578 }
 0x284   :  { %v580_v49 = vmax.f32 %v579_v48, 1e-24 }
 0x286   :  { %802 = vrsqrt.f32 %v580_v49 }
 0x293   :  { %v803_v50 = vpop.eup %802 }
 0x294   :  { %v582_v51 = vmul.f32 %v803_v50, %v574_v45 }
 0x296   :  { %583 = vst [vmem:[#allocation8] sm:$0xff] %v582_v51 }
 0x297   :  { %875 = shalt.err (!%p872_p5)
}
 0x298   :  { %593 = dma.vmem_to_hbm [thread:$0]  %s591_s11, 128, %s951_s5, [#allocation4]  }
 0x299   :  { %888 = dma.done.wait [#allocation4], 128  }
 0x29a   :  { %889 = vsyncadd [#allocation4], 4294967168 }
 0x29b   :  { %597 = vsyncpa [#allocation3], 1 }
 0x29c   :  { %598 = vsyncpa [#allocation6], 1 }
 0x29d   :  { %599 = vsyncpa [#allocation4], 1 }

</bundles_post_ra>
